<compile_context>
chip_gen: v7x
topology: tpu7x:2x2x1
jax: 0.10.0
libtpu: 0.0.40
codegen_flags: <defaults>
</compile_context>

<pallas_src>
import math
from functools import partial

import jax
import jax.numpy as jnp
from jax import lax
from jax.experimental import pallas as pl
from jax.experimental.pallas import tpu as pltpu


def _default_block_l():
    # 256 fills the 2x256^2 MXU on v6e/v7x; 128 already fills v5e's 4x128^2.
    try:
        kind = jax.devices()[0].device_kind.lower()
        if "v5 lite" in kind or "v5e" in kind or "v5lite" in kind:
            return 128
    except Exception:
        pass
    return 256


# ---------------------------------------------------------------------------
# Fused kernel: projections + multi-head attention + output projection
# ---------------------------------------------------------------------------

def _fused_attention_kernel(q_ref, k_ref, v_ref,
                            wq_ref, bq_ref, wk_ref, bk_ref,
                            wv_ref, bv_ref, wo_ref, bo_ref,
                            o_ref, kproj_ref, vproj_ref,
                            *, n_heads, d_keys, d_values):
    cd = kproj_ref.dtype  # compute (MXU operand) dtype; weights/inputs already cd

    # --- per-batch K/V projections: compute once (first query tile), cache in
    #     VMEM scratch and reuse for every other query tile of this batch. ---
    @pl.when(pl.program_id(1) == 0)
    def _():
        xk = k_ref[0]                                          # (S, d_model)
        xv = v_ref[0]                                          # (S, d_model)
        kp = jnp.dot(xk, wk_ref[...], preferred_element_type=jnp.float32) + bk_ref[...]
        vp = jnp.dot(xv, wv_ref[...], preferred_element_type=jnp.float32) + bv_ref[...]
        kproj_ref[...] = kp.astype(cd)
        vproj_ref[...] = vp.astype(cd)

    # --- Q projection for this tile (softmax scale is pre-folded into wq/bq) ---
    xq = q_ref[0]                                              # (TL, d_model)
    q = jnp.dot(xq, wq_ref[...], preferred_element_type=jnp.float32) + bq_ref[...]
    q_cd = q.astype(cd)                                        # single cast, not per-head

    k = kproj_ref[...]                                         # (S, H*E), cd
    v = vproj_ref[...]                                         # (S, H*Dv), cd

    tl = q.shape[0]
    d_model_out = wo_ref.shape[1]
    acc = jnp.zeros((tl, d_model_out), jnp.float32)

    dn_qk = (((1,), (1,)), ((), ()))    # contract E dims, no explicit K transpose

    # TODO(synk): for n_heads >= 8 switch to lax.fori_loop to bound live ranges
    # (vreg pressure); small head counts are cheaper fully unrolled.
    for h in range(n_heads):
        qh = q_cd[:, h * d_keys:(h + 1) * d_keys]              # (TL, E)
        kh = k[:, h * d_keys:(h + 1) * d_keys]                 # (S,  E)
        vh = v[:, h * d_values:(h + 1) * d_values]             # (S,  Dv)

        s = lax.dot_general(qh, kh, dn_qk,
                            preferred_element_type=jnp.float32)  # (TL, S) f32
        m = jnp.max(s, axis=-1, keepdims=True)
        p = jnp.exp(s - m)                                       # f32 softmax
        p = p * pl.reciprocal(jnp.sum(p, axis=-1, keepdims=True), approx=True)

        oh = jnp.dot(p.astype(cd), vh,
                     preferred_element_type=jnp.float32)         # (TL, Dv)

        # Fold output projection: concat_h(oh) @ Wo == sum_h oh @ Wo[h*Dv:(h+1)*Dv]
        woh = wo_ref[h * d_values:(h + 1) * d_values, :]
        acc = acc + jnp.dot(oh.astype(cd), woh,
                            preferred_element_type=jnp.float32)

    o_ref[0] = (acc + bo_ref[...]).astype(o_ref.dtype)           # lane-dense (TL, d_model)


def fused_attention_forward(queries, keys, values, params, *, n_heads, d_keys,
                            d_values, compute_dtype, block_l, out_dtype=None):
    """params = (wq, bq, wk, bk, wv, bv, wo, bo) with weights in compute_dtype,
    softmax scale pre-folded into wq/bq, biases f32 with shape (1, n)."""
    wq, bq, wk, bk, wv, bv, wo, bo = params
    B, L, d_model = queries.shape
    S = keys.shape[1]
    out_dtype = out_dtype or queries.dtype
    block_l = min(block_l, L)
    num_l = pl.cdiv(L, block_l)
    dkh = d_keys * n_heads
    dvh = d_values * n_heads

    # Cast activations to the MXU operand dtype on the host (halves DMA bytes
    # for bf16) -- softmax / bias / accumulation stay f32 inside the kernel.
    qc = queries.astype(compute_dtype)
    kc = keys.astype(compute_dtype)
    vc = values.astype(compute_dtype)

    # Scoped-VMEM budget derived from the actually-resident blocks (+ headroom).
    cd_b = jnp.dtype(compute_dtype).itemsize
    out_b = jnp.dtype(out_dtype).itemsize
    est = (2 * block_l * d_model * cd_b                 # q tile (double buffered)
           + 2 * block_l * d_model * out_b              # out tile (double buffered)
           + 2 * S * d_model * cd_b                     # k + v blocks (single buffered)
           + 2 * d_model * (dkh + dvh) * cd_b           # wq,wk,wv,wo (single buffered)
           + S * (dkh + dvh) * cd_b                     # projected K/V scratch
           + 4 * block_l * (3 * S + dkh + dvh + 2 * d_model))  # f32 temporaries
    vmem_limit = int(min(max(2 * est, 32 << 20), 64 << 20))

    kernel = partial(_fused_attention_kernel, n_heads=n_heads, d_keys=d_keys,
                     d_values=d_values)

    single = pl.Buffered(1)  # no double-buffering for (batch-)grid-invariant operands

    # TODO(synk): for very long S add a KV grid axis with online (flash-style)
    # softmax instead of keeping the full-S K/V projections resident in VMEM.
    return pl.pallas_call(
        kernel,
        out_shape=jax.ShapeDtypeStruct((B, L, d_model), out_dtype),
        grid=(B, num_l),
        in_specs=[
            pl.BlockSpec((1, block_l, d_model), lambda b, l: (b, l, 0)),
            pl.BlockSpec((1, S, d_model), lambda b, l: (b, 0, 0), pipeline_mode=single),
            pl.BlockSpec((1, S, d_model), lambda b, l: (b, 0, 0), pipeline_mode=single),
            pl.BlockSpec((d_model, dkh), lambda b, l: (0, 0), pipeline_mode=single),
            pl.BlockSpec((1, dkh), lambda b, l: (0, 0), pipeline_mode=single),
            pl.BlockSpec((d_model, dkh), lambda b, l: (0, 0), pipeline_mode=single),
            pl.BlockSpec((1, dkh), lambda b, l: (0, 0), pipeline_mode=single),
            pl.BlockSpec((d_model, dvh), lambda b, l: (0, 0), pipeline_mode=single),
            pl.BlockSpec((1, dvh), lambda b, l: (0, 0), pipeline_mode=single),
            pl.BlockSpec((dvh, d_model), lambda b, l: (0, 0), pipeline_mode=single),
            pl.BlockSpec((1, d_model), lambda b, l: (0, 0), pipeline_mode=single),
        ],
        out_specs=pl.BlockSpec((1, block_l, d_model), lambda b, l: (b, l, 0)),
        scratch_shapes=[pltpu.VMEM((S, dkh), compute_dtype),   # projected K cache
                        pltpu.VMEM((S, dvh), compute_dtype)],  # projected V cache
        compiler_params=pltpu.CompilerParams(
            # batch axis parallel (v7x megacore); query-tile axis arbitrary
            # because the K/V scratch carries across it.
            dimension_semantics=("parallel", "arbitrary"),
            vmem_limit_bytes=vmem_limit),
    )(qc, kc, vc, wq, bq, wk, bk, wv, bv, wo, bo)


# ---------------------------------------------------------------------------
# S == 0 fast path: out_projection(query_projection(x)) in one fused kernel
# (exactly the PyTorch fast path; shape-valid only when d_keys == d_values)
# ---------------------------------------------------------------------------

def _double_linear_kernel(x_ref, w1_ref, b1_ref, w2_ref, b2_ref, o_ref):
    cd = w1_ref.dtype
    x = x_ref[0]
    h = jnp.dot(x, w1_ref[...], preferred_element_type=jnp.float32) + b1_ref[...]
    o_ref[0] = (jnp.dot(h.astype(cd), w2_ref[...],
                        preferred_element_type=jnp.float32) + b2_ref[...]
                ).astype(o_ref.dtype)


# ---------------------------------------------------------------------------
# AttentionLayer (parameters + forward glue)
# ---------------------------------------------------------------------------

class AttentionLayer:
    """JAX/Pallas port of pytorch_forecasting AttentionLayer with a standard
    un-masked scaled-dot-product FullAttention inner attention
    (output_attention=False)."""

    def __init__(self, key, d_model, n_heads, d_keys=None, d_values=None,
                 compute_dtype=jnp.bfloat16, block_l=None):
        d_keys = d_keys or d_model // n_heads
        d_values = d_values or d_model // n_heads
        self.n_heads = n_heads
        self.d_keys = d_keys
        self.d_values = d_values
        self.d_model = d_model
        self.compute_dtype = compute_dtype           # MXU operand dtype; softmax stays f32
        self.block_l = block_l if block_l is not None else _default_block_l()
        self._param_cache = {}

        def init_linear(k, fan_in, fan_out):
            kw, kb = jax.random.split(k)
            bound = 1.0 / math.sqrt(fan_in)
            # weight stored as (fan_in, fan_out) == PyTorch weight.T
            w = jax.random.uniform(kw, (fan_in, fan_out), jnp.float32, -bound, bound)
            b = jax.random.uniform(kb, (fan_out,), jnp.float32, -bound, bound)
            return w, b

        kq, kk, kv, ko = jax.random.split(key, 4)
        self.wq, self.bq = init_linear(kq, d_model, d_keys * n_heads)
        self.wk, self.bk = init_linear(kk, d_model, d_keys * n_heads)
        self.wv, self.bv = init_linear(kv, d_model, d_values * n_heads)
        self.wo, self.bo = init_linear(ko, d_values * n_heads, d_model)

    # Kernel-ready params: weights pre-cast to compute_dtype (halves DMA bytes
    # in bf16 mode), softmax scale folded into wq/bq, biases kept f32 as (1, n).
    def _attn_params(self, cd):
        name = jnp.dtype(cd).name
        if name not in self._param_cache:
            scale = 1.0 / math.sqrt(self.d_keys)
            self._param_cache[name] = (
                (self.wq * scale).astype(cd), (self.bq * scale).reshape(1, -1),
                self.wk.astype(cd), self.bk.reshape(1, -1),
                self.wv.astype(cd), self.bv.reshape(1, -1),
                self.wo.astype(cd), self.bo.reshape(1, -1),
            )
        return self._param_cache[name]

    def _proj_only(self, queries):
        B, L, d_model = queries.shape
        cd = self.compute_dtype
        block_l = min(self.block_l, L)
        num_l = pl.cdiv(L, block_l)
        dkh = self.d_keys * self.n_heads
        dvh = self.d_values * self.n_heads
        w1 = self.wq.astype(cd)                 # NOTE: no softmax scale on this path
        b1 = self.bq.reshape(1, -1)
        w2 = self.wo.astype(cd)
        b2 = self.bo.reshape(1, -1)

        cd_b = jnp.dtype(cd).itemsize
        est = (2 * block_l * d_model * cd_b
               + 2 * block_l * d_model * queries.dtype.itemsize
               + (d_model * dkh + dvh * d_model) * cd_b
               + 8 * block_l * (dkh + d_model))
        vmem_limit = int(min(max(2 * est, 32 << 20), 64 << 20))
        single = pl.Buffered(1)

        return pl.pallas_call(
            _double_linear_kernel,
            out_shape=jax.ShapeDtypeStruct((B, L, d_model), queries.dtype),
            grid=(B, num_l),
            in_specs=[
                pl.BlockSpec((1, block_l, d_model), lambda b, l: (b, l, 0)),
                pl.BlockSpec((d_model, dkh), lambda b, l: (0, 0), pipeline_mode=single),
                pl.BlockSpec((1, dkh), lambda b, l: (0, 0), pipeline_mode=single),
                pl.BlockSpec((dvh, d_model), lambda b, l: (0, 0), pipeline_mode=single),
                pl.BlockSpec((1, d_model), lambda b, l: (0, 0), pipeline_mode=single),
            ],
            out_specs=pl.BlockSpec((1, block_l, d_model), lambda b, l: (b, l, 0)),
            compiler_params=pltpu.CompilerParams(
                dimension_semantics=("parallel", "parallel"),
                vmem_limit_bytes=vmem_limit),
        )(queries.astype(cd), w1, b1, w2, b2)

    def __call__(self, queries, keys, values, attn_mask=None, tau=None, delta=None):
        # TODO(synk): attn_mask / tau / delta (masked / de-stationary attention
        # variants) are not supported; only the default un-masked FullAttention
        # path with attn_mask=None is implemented, and attention weights are
        # not returned (output_attention=False).
        S = keys.shape[1]

        if S == 0:
            # Mirrors the PyTorch fast path (valid only when d_keys == d_values,
            # exactly as in the reference module).
            return self._proj_only(queries), None

        out = fused_attention_forward(
            queries, keys, values,
            self._attn_params(self.compute_dtype),
            n_heads=self.n_heads, d_keys=self.d_keys, d_values=self.d_values,
            compute_dtype=self.compute_dtype, block_l=self.block_l)
        return out, None


# ---------------------------------------------------------------------------
# Reference (pure JAX, f32) for sanity check
# ---------------------------------------------------------------------------

def reference_forward(layer, queries, keys, values):
    B, L, _ = queries.shape
    S = keys.shape[1]
    H, E, Dv = layer.n_heads, layer.d_keys, layer.d_values
    q = (queries @ layer.wq + layer.bq).reshape(B, L, H, E)
    k = (keys @ layer.wk + layer.bk).reshape(B, S, H, E)
    v = (values @ layer.wv + layer.bv).reshape(B, S, H, Dv)
    scores = jnp.einsum("blhe,bshe->bhls", q, k) / math.sqrt(E)
    p = jax.nn.softmax(scores, axis=-1)
    out = jnp.einsum("bhls,bshd->blhd", p, v).reshape(B, L, H * Dv)
    return out @ layer.wo + layer.bo


# ---------------------------------------------------------------------------
# Main
# ---------------------------------------------------------------------------

if __name__ == "__main__":
    B, L, S = 2, 8, 8
    d_model, n_heads = 32, 4

    root = jax.random.PRNGKey(0)
    kp, kq, kk, kv = jax.random.split(root, 4)

    queries = jax.random.normal(kq, (B, L, d_model), jnp.float32)
    keys = jax.random.normal(kk, (B, S, d_model), jnp.float32)
    values = jax.random.normal(kv, (B, S, d_model), jnp.float32)

    # --- f32 MXU-operand path: tight check against the pure-JAX reference ---
    layer = AttentionLayer(kp, d_model, n_heads, compute_dtype=jnp.float32)
    out_f32, attn = layer(queries, keys, values, attn_mask=None)
    out_f32 = jax.block_until_ready(out_f32)

    ref = reference_forward(layer, queries, keys, values)
    assert out_f32.shape == (B, L, d_model)
    assert attn is None
    assert jnp.allclose(out_f32, ref, atol=5e-3, rtol=5e-3), "f32 path mismatch vs reference"

    # --- bf16 MXU-operand path (recommended on v5e/v6e/v7x): looser check ---
    layer.compute_dtype = jnp.bfloat16
    out_bf16, _ = layer(queries, keys, values, attn_mask=None)
    out_bf16 = jax.block_until_ready(out_bf16)
    assert jnp.allclose(out_bf16, ref, atol=5e-2, rtol=5e-2), "bf16 path mismatch vs reference"

    # --- S == 0 fast path (projection-only), mirrors the PyTorch branch ---
    out0, attn0 = layer(queries,
                        jnp.zeros((B, 0, d_model), jnp.float32),
                        jnp.zeros((B, 0, d_model), jnp.float32),
                        attn_mask=None)
    out0 = jax.block_until_ready(out0)
    ref0 = (queries @ layer.wq + layer.bq) @ layer.wo + layer.bo
    assert attn0 is None
    assert jnp.allclose(out0, ref0, atol=5e-2, rtol=5e-2), "S==0 path mismatch vs reference"

    print("KERNEL_OK")
</pallas_src>

<mosaic_0001>
module attributes {stable_mosaic.version = 11 : i64} {
  func.func @_fused_attention_kernel(%arg0: i32, %arg1: i32, %arg2: memref<1x8x32xf32, #tpu.memory_space<vmem>>, %arg3: memref<1x8x32xf32, #tpu.memory_space<vmem>>, %arg4: memref<1x8x32xf32, #tpu.memory_space<vmem>>, %arg5: memref<32x32xf32, #tpu.memory_space<vmem>>, %arg6: memref<1x32xf32, #tpu.memory_space<vmem>>, %arg7: memref<32x32xf32, #tpu.memory_space<vmem>>, %arg8: memref<1x32xf32, #tpu.memory_space<vmem>>, %arg9: memref<32x32xf32, #tpu.memory_space<vmem>>, %arg10: memref<1x32xf32, #tpu.memory_space<vmem>>, %arg11: memref<32x32xf32, #tpu.memory_space<vmem>>, %arg12: memref<1x32xf32, #tpu.memory_space<vmem>>, %arg13: memref<1x8x32xf32, #tpu.memory_space<vmem>>, %arg14: memref<8x32xf32, #tpu.memory_space<vmem>>, %arg15: memref<8x32xf32, #tpu.memory_space<vmem>>) attributes {dimension_semantics = [#tpu.dimension_semantics<parallel>, #tpu.dimension_semantics<arbitrary>], iteration_bounds = array<i64: 2, 1>, scalar_prefetch = 0 : i64, scratch_operands = 2 : i64, tpu.core_type = #tpu.core_type<tc>, window_params = [{transform_indices = @transform_0, window_bounds = array<i64: 1, 8, 32>}, {pipeline_mode = #tpu.pipeline_mode<synchronous>, transform_indices = @transform_1, window_bounds = array<i64: 1, 8, 32>}, {pipeline_mode = #tpu.pipeline_mode<synchronous>, transform_indices = @transform_2, window_bounds = array<i64: 1, 8, 32>}, {pipeline_mode = #tpu.pipeline_mode<synchronous>, transform_indices = @transform_3, window_bounds = array<i64: 32, 32>}, {pipeline_mode = #tpu.pipeline_mode<synchronous>, transform_indices = @transform_4, window_bounds = array<i64: 1, 32>}, {pipeline_mode = #tpu.pipeline_mode<synchronous>, transform_indices = @transform_5, window_bounds = array<i64: 32, 32>}, {pipeline_mode = #tpu.pipeline_mode<synchronous>, transform_indices = @transform_6, window_bounds = array<i64: 1, 32>}, {pipeline_mode = #tpu.pipeline_mode<synchronous>, transform_indices = @transform_7, window_bounds = array<i64: 32, 32>}, {pipeline_mode = #tpu.pipeline_mode<synchronous>, transform_indices = @transform_8, window_bounds = array<i64: 1, 32>}, {pipeline_mode = #tpu.pipeline_mode<synchronous>, transform_indices = @transform_9, window_bounds = array<i64: 32, 32>}, {pipeline_mode = #tpu.pipeline_mode<synchronous>, transform_indices = @transform_10, window_bounds = array<i64: 1, 32>}, {transform_indices = @transform_11, window_bounds = array<i64: 1, 8, 32>}]} {
    %c0_i32 = arith.constant 0 : i32
    %0 = arith.cmpi eq, %arg1, %c0_i32 : i32
    %1 = arith.extui %0 : i1 to i32
    %c0_i32_0 = arith.constant 0 : i32
    %2 = arith.cmpi ne, %1, %c0_i32_0 : i32
    scf.if %2 {
      %c0_42 = arith.constant 0 : index
      %c0_43 = arith.constant 0 : index
      %c0_44 = arith.constant 0 : index
      %91 = vector.load %arg3[%c0_42, %c0_43, %c0_44] : memref<1x8x32xf32, #tpu.memory_space<vmem>>, vector<1x8x32xf32>
      %92 = vector.shape_cast %91 : vector<1x8x32xf32> to vector<8x32xf32>
      %c0_45 = arith.constant 0 : index
      %c0_46 = arith.constant 0 : index
      %c0_47 = arith.constant 0 : index
      %93 = vector.load %arg4[%c0_45, %c0_46, %c0_47] : memref<1x8x32xf32, #tpu.memory_space<vmem>>, vector<1x8x32xf32>
      %94 = vector.shape_cast %93 : vector<1x8x32xf32> to vector<8x32xf32>
      %c0_48 = arith.constant 0 : index
      %c0_49 = arith.constant 0 : index
      %95 = vector.load %arg7[%c0_48, %c0_49] : memref<32x32xf32, #tpu.memory_space<vmem>>, vector<32x32xf32>
      %cst_50 = arith.constant dense<0.000000e+00> : vector<8x32xf32>
      %96 = tpu.matmul %92, %95, %cst_50 {dimension_numbers = #tpu.dot_dimension_numbers<[1], [0], [0], [1], [0, 0, 1, 1], [], []>} : vector<8x32xf32>, vector<32x32xf32>, vector<8x32xf32> -> vector<8x32xf32>
      %c0_51 = arith.constant 0 : index
      %c0_52 = arith.constant 0 : index
      %97 = vector.load %arg8[%c0_51, %c0_52] : memref<1x32xf32, #tpu.memory_space<vmem>>, vector<1x32xf32>
      %98 = vector.broadcast %97 : vector<1x32xf32> to vector<8x32xf32>
      %99 = arith.addf %96, %98 : vector<8x32xf32>
      %c0_53 = arith.constant 0 : index
      %c0_54 = arith.constant 0 : index
      %100 = vector.load %arg9[%c0_53, %c0_54] : memref<32x32xf32, #tpu.memory_space<vmem>>, vector<32x32xf32>
      %cst_55 = arith.constant dense<0.000000e+00> : vector<8x32xf32>
      %101 = tpu.matmul %94, %100, %cst_55 {dimension_numbers = #tpu.dot_dimension_numbers<[1], [0], [0], [1], [0, 0, 1, 1], [], []>} : vector<8x32xf32>, vector<32x32xf32>, vector<8x32xf32> -> vector<8x32xf32>
      %c0_56 = arith.constant 0 : index
      %c0_57 = arith.constant 0 : index
      %102 = vector.load %arg10[%c0_56, %c0_57] : memref<1x32xf32, #tpu.memory_space<vmem>>, vector<1x32xf32>
      %103 = vector.broadcast %102 : vector<1x32xf32> to vector<8x32xf32>
      %104 = arith.addf %101, %103 : vector<8x32xf32>
      %c0_58 = arith.constant 0 : index
      %c0_59 = arith.constant 0 : index
      %105 = vector.load %arg14[%c0_58, %c0_59] : memref<8x32xf32, #tpu.memory_space<vmem>>, vector<8x32xf32>
      tpu.vector_store %arg14[%c0_58, %c0_59], %99 {strides = array<i32>} : memref<8x32xf32, #tpu.memory_space<vmem>>, vector<8x32xf32>,
      %c0_60 = arith.constant 0 : index
      %c0_61 = arith.constant 0 : index
      %106 = vector.load %arg15[%c0_60, %c0_61] : memref<8x32xf32, #tpu.memory_space<vmem>>, vector<8x32xf32>
      tpu.vector_store %arg15[%c0_60, %c0_61], %104 {strides = array<i32>} : memref<8x32xf32, #tpu.memory_space<vmem>>, vector<8x32xf32>,
    } else {
    }
    %c0 = arith.constant 0 : index
    %c0_1 = arith.constant 0 : index
    %c0_2 = arith.constant 0 : index
    %3 = vector.load %arg2[%c0, %c0_1, %c0_2] : memref<1x8x32xf32, #tpu.memory_space<vmem>>, vector<1x8x32xf32>
    %4 = vector.shape_cast %3 : vector<1x8x32xf32> to vector<8x32xf32>
    %c0_3 = arith.constant 0 : index
    %c0_4 = arith.constant 0 : index
    %5 = vector.load %arg5[%c0_3, %c0_4] : memref<32x32xf32, #tpu.memory_space<vmem>>, vector<32x32xf32>
    %cst = arith.constant dense<0.000000e+00> : vector<8x32xf32>
    %6 = tpu.matmul %4, %5, %cst {dimension_numbers = #tpu.dot_dimension_numbers<[1], [0], [0], [1], [0, 0, 1, 1], [], []>} : vector<8x32xf32>, vector<32x32xf32>, vector<8x32xf32> -> vector<8x32xf32>
    %c0_5 = arith.constant 0 : index
    %c0_6 = arith.constant 0 : index
    %7 = vector.load %arg6[%c0_5, %c0_6] : memref<1x32xf32, #tpu.memory_space<vmem>>, vector<1x32xf32>
    %8 = vector.broadcast %7 : vector<1x32xf32> to vector<8x32xf32>
    %9 = arith.addf %6, %8 : vector<8x32xf32>
    %c0_7 = arith.constant 0 : index
    %c0_8 = arith.constant 0 : index
    %10 = vector.load %arg14[%c0_7, %c0_8] : memref<8x32xf32, #tpu.memory_space<vmem>>, vector<8x32xf32>
    %c0_9 = arith.constant 0 : index
    %c0_10 = arith.constant 0 : index
    %11 = vector.load %arg15[%c0_9, %c0_10] : memref<8x32xf32, #tpu.memory_space<vmem>>, vector<8x32xf32>
    %cst_11 = arith.constant 0.000000e+00 : f32
    %12 = vector.broadcast %cst_11 : f32 to vector<8x32xf32>
    %13 = vector.extract_strided_slice %9 {offsets = [0, 0], sizes = [8, 8], strides = [1, 1]} : vector<8x32xf32> to vector<8x8xf32>
    %14 = vector.extract_strided_slice %10 {offsets = [0, 0], sizes = [8, 8], strides = [1, 1]} : vector<8x32xf32> to vector<8x8xf32>
    %15 = vector.extract_strided_slice %11 {offsets = [0, 0], sizes = [8, 8], strides = [1, 1]} : vector<8x32xf32> to vector<8x8xf32>
    %cst_12 = arith.constant dense<0.000000e+00> : vector<8x8xf32>
    %16 = tpu.matmul %13, %14, %cst_12 {dimension_numbers = #tpu.dot_dimension_numbers<[1], [1], [0], [0], [0, 0, 1, 0], [], []>} : vector<8x8xf32>, vector<8x8xf32>, vector<8x8xf32> -> vector<8x8xf32>
    %cst_13 = arith.constant dense<0xFF800000> : vector<8xf32>
    %17 = vector.multi_reduction <maximumf>, %16, %cst_13 [1] : vector<8x8xf32> to vector<8xf32>
    %18 = vector.shape_cast %17 : vector<8xf32> to vector<8x1xf32>
    %19 = vector.broadcast %18 : vector<8x1xf32> to vector<8x8xf32>
    %20 = arith.subf %16, %19 : vector<8x8xf32>
    %21 = math.exp %20 : vector<8x8xf32>
    %cst_14 = arith.constant dense<0.000000e+00> : vector<8xf32>
    %22 = vector.multi_reduction <add>, %21, %cst_14 [1] : vector<8x8xf32> to vector<8xf32>
    %23 = vector.shape_cast %22 : vector<8xf32> to vector<8x1xf32>
    %24 = tpu.reciprocal %23 {approx = true} : vector<8x1xf32> -> vector<8x1xf32>
    %25 = vector.broadcast %24 : vector<8x1xf32> to vector<8x8xf32>
    %26 = arith.mulf %21, %25 : vector<8x8xf32>
    %cst_15 = arith.constant dense<0.000000e+00> : vector<8x8xf32>
    %27 = tpu.matmul %26, %15, %cst_15 {dimension_numbers = #tpu.dot_dimension_numbers<[1], [0], [0], [1], [0, 0, 1, 1], [], []>} : vector<8x8xf32>, vector<8x8xf32>, vector<8x8xf32> -> vector<8x8xf32>
    %c0_16 = arith.constant 0 : index
    %c0_17 = arith.constant 0 : index
    %28 = vector.load %arg11[%c0_16, %c0_17] : memref<32x32xf32, #tpu.memory_space<vmem>>, vector<8x32xf32>
    %cst_18 = arith.constant dense<0.000000e+00> : vector<8x32xf32>
    %29 = tpu.matmul %27, %28, %cst_18 {dimension_numbers = #tpu.dot_dimension_numbers<[1], [0], [0], [1], [0, 0, 1, 1], [], []>} : vector<8x8xf32>, vector<8x32xf32>, vector<8x32xf32> -> vector<8x32xf32>
    %30 = arith.addf %12, %29 : vector<8x32xf32>
    %31 = vector.extract_strided_slice %9 {offsets = [0, 8], sizes = [8, 8], strides = [1, 1]} : vector<8x32xf32> to vector<8x8xf32>
    %32 = vector.extract_strided_slice %10 {offsets = [0, 8], sizes = [8, 8], strides = [1, 1]} : vector<8x32xf32> to vector<8x8xf32>
    %33 = vector.extract_strided_slice %11 {offsets = [0, 8], sizes = [8, 8], strides = [1, 1]} : vector<8x32xf32> to vector<8x8xf32>
    %cst_19 = arith.constant dense<0.000000e+00> : vector<8x8xf32>
    %34 = tpu.matmul %31, %32, %cst_19 {dimension_numbers = #tpu.dot_dimension_numbers<[1], [1], [0], [0], [0, 0, 1, 0], [], []>} : vector<8x8xf32>, vector<8x8xf32>, vector<8x8xf32> -> vector<8x8xf32>
    %cst_20 = arith.constant dense<0xFF800000> : vector<8xf32>
    %35 = vector.multi_reduction <maximumf>, %34, %cst_20 [1] : vector<8x8xf32> to vector<8xf32>
    %36 = vector.shape_cast %35 : vector<8xf32> to vector<8x1xf32>
    %37 = vector.broadcast %36 : vector<8x1xf32> to vector<8x8xf32>
    %38 = arith.subf %34, %37 : vector<8x8xf32>
    %39 = math.exp %38 : vector<8x8xf32>
    %cst_21 = arith.constant dense<0.000000e+00> : vector<8xf32>
    %40 = vector.multi_reduction <add>, %39, %cst_21 [1] : vector<8x8xf32> to vector<8xf32>
    %41 = vector.shape_cast %40 : vector<8xf32> to vector<8x1xf32>
    %42 = tpu.reciprocal %41 {approx = true} : vector<8x1xf32> -> vector<8x1xf32>
    %43 = vector.broadcast %42 : vector<8x1xf32> to vector<8x8xf32>
    %44 = arith.mulf %39, %43 : vector<8x8xf32>
    %cst_22 = arith.constant dense<0.000000e+00> : vector<8x8xf32>
    %45 = tpu.matmul %44, %33, %cst_22 {dimension_numbers = #tpu.dot_dimension_numbers<[1], [0], [0], [1], [0, 0, 1, 1], [], []>} : vector<8x8xf32>, vector<8x8xf32>, vector<8x8xf32> -> vector<8x8xf32>
    %c8 = arith.constant 8 : index
    %c0_23 = arith.constant 0 : index
    %46 = vector.load %arg11[%c8, %c0_23] : memref<32x32xf32, #tpu.memory_space<vmem>>, vector<8x32xf32>
    %cst_24 = arith.constant dense<0.000000e+00> : vector<8x32xf32>
    %47 = tpu.matmul %45, %46, %cst_24 {dimension_numbers = #tpu.dot_dimension_numbers<[1], [0], [0], [1], [0, 0, 1, 1], [], []>} : vector<8x8xf32>, vector<8x32xf32>, vector<8x32xf32> -> vector<8x32xf32>
    %48 = arith.addf %30, %47 : vector<8x32xf32>
    %49 = vector.extract_strided_slice %9 {offsets = [0, 16], sizes = [8, 8], strides = [1, 1]} : vector<8x32xf32> to vector<8x8xf32>
    %50 = vector.extract_strided_slice %10 {offsets = [0, 16], sizes = [8, 8], strides = [1, 1]} : vector<8x32xf32> to vector<8x8xf32>
    %51 = vector.extract_strided_slice %11 {offsets = [0, 16], sizes = [8, 8], strides = [1, 1]} : vector<8x32xf32> to vector<8x8xf32>
    %cst_25 = arith.constant dense<0.000000e+00> : vector<8x8xf32>
    %52 = tpu.matmul %49, %50, %cst_25 {dimension_numbers = #tpu.dot_dimension_numbers<[1], [1], [0], [0], [0, 0, 1, 0], [], []>} : vector<8x8xf32>, vector<8x8xf32>, vector<8x8xf32> -> vector<8x8xf32>
    %cst_26 = arith.constant dense<0xFF800000> : vector<8xf32>
    %53 = vector.multi_reduction <maximumf>, %52, %cst_26 [1] : vector<8x8xf32> to vector<8xf32>
    %54 = vector.shape_cast %53 : vector<8xf32> to vector<8x1xf32>
    %55 = vector.broadcast %54 : vector<8x1xf32> to vector<8x8xf32>
    %56 = arith.subf %52, %55 : vector<8x8xf32>
    %57 = math.exp %56 : vector<8x8xf32>
    %cst_27 = arith.constant dense<0.000000e+00> : vector<8xf32>
    %58 = vector.multi_reduction <add>, %57, %cst_27 [1] : vector<8x8xf32> to vector<8xf32>
    %59 = vector.shape_cast %58 : vector<8xf32> to vector<8x1xf32>
    %60 = tpu.reciprocal %59 {approx = true} : vector<8x1xf32> -> vector<8x1xf32>
    %61 = vector.broadcast %60 : vector<8x1xf32> to vector<8x8xf32>
    %62 = arith.mulf %57, %61 : vector<8x8xf32>
    %cst_28 = arith.constant dense<0.000000e+00> : vector<8x8xf32>
    %63 = tpu.matmul %62, %51, %cst_28 {dimension_numbers = #tpu.dot_dimension_numbers<[1], [0], [0], [1], [0, 0, 1, 1], [], []>} : vector<8x8xf32>, vector<8x8xf32>, vector<8x8xf32> -> vector<8x8xf32>
    %c16 = arith.constant 16 : index
    %c0_29 = arith.constant 0 : index
    %64 = vector.load %arg11[%c16, %c0_29] : memref<32x32xf32, #tpu.memory_space<vmem>>, vector<8x32xf32>
    %cst_30 = arith.constant dense<0.000000e+00> : vector<8x32xf32>
    %65 = tpu.matmul %63, %64, %cst_30 {dimension_numbers = #tpu.dot_dimension_numbers<[1], [0], [0], [1], [0, 0, 1, 1], [], []>} : vector<8x8xf32>, vector<8x32xf32>, vector<8x32xf32> -> vector<8x32xf32>
    %66 = arith.addf %48, %65 : vector<8x32xf32>
    %67 = vector.extract_strided_slice %9 {offsets = [0, 24], sizes = [8, 8], strides = [1, 1]} : vector<8x32xf32> to vector<8x8xf32>
    %68 = vector.extract_strided_slice %10 {offsets = [0, 24], sizes = [8, 8], strides = [1, 1]} : vector<8x32xf32> to vector<8x8xf32>
    %69 = vector.extract_strided_slice %11 {offsets = [0, 24], sizes = [8, 8], strides = [1, 1]} : vector<8x32xf32> to vector<8x8xf32>
    %cst_31 = arith.constant dense<0.000000e+00> : vector<8x8xf32>
    %70 = tpu.matmul %67, %68, %cst_31 {dimension_numbers = #tpu.dot_dimension_numbers<[1], [1], [0], [0], [0, 0, 1, 0], [], []>} : vector<8x8xf32>, vector<8x8xf32>, vector<8x8xf32> -> vector<8x8xf32>
    %cst_32 = arith.constant dense<0xFF800000> : vector<8xf32>
    %71 = vector.multi_reduction <maximumf>, %70, %cst_32 [1] : vector<8x8xf32> to vector<8xf32>
    %72 = vector.shape_cast %71 : vector<8xf32> to vector<8x1xf32>
    %73 = vector.broadcast %72 : vector<8x1xf32> to vector<8x8xf32>
    %74 = arith.subf %70, %73 : vector<8x8xf32>
    %75 = math.exp %74 : vector<8x8xf32>
    %cst_33 = arith.constant dense<0.000000e+00> : vector<8xf32>
    %76 = vector.multi_reduction <add>, %75, %cst_33 [1] : vector<8x8xf32> to vector<8xf32>
    %77 = vector.shape_cast %76 : vector<8xf32> to vector<8x1xf32>
    %78 = tpu.reciprocal %77 {approx = true} : vector<8x1xf32> -> vector<8x1xf32>
    %79 = vector.broadcast %78 : vector<8x1xf32> to vector<8x8xf32>
    %80 = arith.mulf %75, %79 : vector<8x8xf32>
    %cst_34 = arith.constant dense<0.000000e+00> : vector<8x8xf32>
    %81 = tpu.matmul %80, %69, %cst_34 {dimension_numbers = #tpu.dot_dimension_numbers<[1], [0], [0], [1], [0, 0, 1, 1], [], []>} : vector<8x8xf32>, vector<8x8xf32>, vector<8x8xf32> -> vector<8x8xf32>
    %c24 = arith.constant 24 : index
    %c0_35 = arith.constant 0 : index
    %82 = vector.load %arg11[%c24, %c0_35] : memref<32x32xf32, #tpu.memory_space<vmem>>, vector<8x32xf32>
    %cst_36 = arith.constant dense<0.000000e+00> : vector<8x32xf32>
    %83 = tpu.matmul %81, %82, %cst_36 {dimension_numbers = #tpu.dot_dimension_numbers<[1], [0], [0], [1], [0, 0, 1, 1], [], []>} : vector<8x8xf32>, vector<8x32xf32>, vector<8x32xf32> -> vector<8x32xf32>
    %84 = arith.addf %66, %83 : vector<8x32xf32>
    %c0_37 = arith.constant 0 : index
    %c0_38 = arith.constant 0 : index
    %85 = vector.load %arg12[%c0_37, %c0_38] : memref<1x32xf32, #tpu.memory_space<vmem>>, vector<1x32xf32>
    %86 = vector.broadcast %85 : vector<1x32xf32> to vector<8x32xf32>
    %87 = arith.addf %84, %86 : vector<8x32xf32>
    %c0_39 = arith.constant 0 : index
    %c0_40 = arith.constant 0 : index
    %c0_41 = arith.constant 0 : index
    %88 = vector.load %arg13[%c0_39, %c0_40, %c0_41] : memref<1x8x32xf32, #tpu.memory_space<vmem>>, vector<1x8x32xf32>
    %89 = vector.shape_cast %88 : vector<1x8x32xf32> to vector<8x32xf32>
    %90 = vector.shape_cast %87 : vector<8x32xf32> to vector<1x8x32xf32>
    tpu.vector_store %arg13[%c0_39, %c0_40, %c0_41], %90 {strides = array<i32>} : memref<1x8x32xf32, #tpu.memory_space<vmem>>, vector<1x8x32xf32>,
    return
  }
  func.func @transform_0(%arg0: i32, %arg1: i32) -> (i32, i32, i32) {
    %c0_i32 = arith.constant 0 : i32
    %c0_i32_0 = arith.constant 0 : i32
    return %arg0, %arg1, %c0_i32 : i32, i32, i32
  }
  func.func @transform_1(%arg0: i32, %arg1: i32) -> (i32, i32, i32) {
    %c0_i32 = arith.constant 0 : i32
    %c0_i32_0 = arith.constant 0 : i32
    %c0_i32_1 = arith.constant 0 : i32
    return %arg0, %c0_i32, %c0_i32_0 : i32, i32, i32
  }
  func.func @transform_2(%arg0: i32, %arg1: i32) -> (i32, i32, i32) {
    %c0_i32 = arith.constant 0 : i32
    %c0_i32_0 = arith.constant 0 : i32
    %c0_i32_1 = arith.constant 0 : i32
    return %arg0, %c0_i32, %c0_i32_0 : i32, i32, i32
  }
  func.func @transform_3(%arg0: i32, %arg1: i32) -> (i32, i32) {
    %c0_i32 = arith.constant 0 : i32
    %c0_i32_0 = arith.constant 0 : i32
    %c0_i32_1 = arith.constant 0 : i32
    return %c0_i32, %c0_i32_0 : i32, i32
  }
  func.func @transform_4(%arg0: i32, %arg1: i32) -> (i32, i32) {
    %c0_i32 = arith.constant 0 : i32
    %c0_i32_0 = arith.constant 0 : i32
    %c0_i32_1 = arith.constant 0 : i32
    return %c0_i32, %c0_i32_0 : i32, i32
  }
  func.func @transform_5(%arg0: i32, %arg1: i32) -> (i32, i32) {
    %c0_i32 = arith.constant 0 : i32
    %c0_i32_0 = arith.constant 0 : i32
    %c0_i32_1 = arith.constant 0 : i32
    return %c0_i32, %c0_i32_0 : i32, i32
  }
  func.func @transform_6(%arg0: i32, %arg1: i32) -> (i32, i32) {
    %c0_i32 = arith.constant 0 : i32
    %c0_i32_0 = arith.constant 0 : i32
    %c0_i32_1 = arith.constant 0 : i32
    return %c0_i32, %c0_i32_0 : i32, i32
  }
  func.func @transform_7(%arg0: i32, %arg1: i32) -> (i32, i32) {
    %c0_i32 = arith.constant 0 : i32
    %c0_i32_0 = arith.constant 0 : i32
    %c0_i32_1 = arith.constant 0 : i32
    return %c0_i32, %c0_i32_0 : i32, i32
  }
  func.func @transform_8(%arg0: i32, %arg1: i32) -> (i32, i32) {
    %c0_i32 = arith.constant 0 : i32
    %c0_i32_0 = arith.constant 0 : i32
    %c0_i32_1 = arith.constant 0 : i32
    return %c0_i32, %c0_i32_0 : i32, i32
  }
  func.func @transform_9(%arg0: i32, %arg1: i32) -> (i32, i32) {
    %c0_i32 = arith.constant 0 : i32
    %c0_i32_0 = arith.constant 0 : i32
    %c0_i32_1 = arith.constant 0 : i32
    return %c0_i32, %c0_i32_0 : i32, i32
  }
  func.func @transform_10(%arg0: i32, %arg1: i32) -> (i32, i32) {
    %c0_i32 = arith.constant 0 : i32
    %c0_i32_0 = arith.constant 0 : i32
    %c0_i32_1 = arith.constant 0 : i32
    return %c0_i32, %c0_i32_0 : i32, i32
  }
  func.func @transform_11(%arg0: i32, %arg1: i32) -> (i32, i32, i32) {
    %c0_i32 = arith.constant 0 : i32
    %c0_i32_0 = arith.constant 0 : i32
    return %arg0, %arg1, %c0_i32 : i32, i32, i32
  }
}

</mosaic_0001>

<bundles_post_ra>
// kernel: tpu_custom_call.1
= control target key start
LH: loop header
LB: loop body
LE: loop exit
PB: predicated region body
PF: predicated region fallthrough
CT: control target
= control target key end

     0   :  { %s3073_s0 = inlined_call_operand.hbm [shape: f32[2,8,32], index: 0, kind: input, shape index: {}]   ;;  %s3074_s1 = inlined_call_operand.hbm [shape: f32[2,8,32], index: 1, kind: input, shape index: {}]   ;;  %s3075_s2 = inlined_call_operand.hbm [shape: f32[2,8,32], index: 2, kind: input, shape index: {}]   ;;  %s3076_s3 = inlined_call_operand.hbm [shape: f32[32,32], index: 3, kind: input, shape index: {}]   ;;  %s3077_s4 = inlined_call_operand.vmem [shape: f32[1,32], index: 4, kind: input, shape index: {}]   ;;  %s3078_s5 = inlined_call_operand.hbm [shape: f32[32,32], index: 5, kind: input, shape index: {}]   ;;  %s3079_s6 = inlined_call_operand.vmem [shape: f32[1,32], index: 6, kind: input, shape index: {}]   ;;  %s3080_s7 = inlined_call_operand.hbm [shape: f32[32,32], index: 7, kind: input, shape index: {}]   ;;  %s3081_s8 = inlined_call_operand.hbm [shape: f32[1,32], index: 8, kind: input, shape index: {}]   ;;  %s3082_s9 = inlined_call_operand.vmem [shape: f32[32,32], index: 9, kind: input, shape index: {}]   ;;  %s3083_s10 = inlined_call_operand.vmem [shape: f32[1,32], index: 10, kind: input, shape index: {}]   ;;  %s3084_s11 = inlined_call_operand.hbm [shape: f32[2,8,32], index: 11, kind: output, shape index: {}]  }
   0x1   :  { %3107 = sst [smem:[#allocation27_spill]] %s3073_s0 }
   0x2   :  { %3108 = sst [smem:[#allocation28_spill]] %s3074_s1 }
   0x3   :  { %3109 = sst [smem:[#allocation29_spill]] %s3077_s4 }
   0x4   :  { %3110 = sst [smem:[#allocation30_spill]] %s3079_s6 }
   0x5   :  { %3111 = sst [smem:[#allocation31_spill]] %s3082_s9 }
   0x6   :  { %3112 = sst [smem:[#allocation32_spill]] %s3083_s10 }
   0x7   :  { %3113 = sst [smem:[#allocation33_spill]] %s3084_s11 }
   0x8   :  { %16 = vsyncpa [#allocation5], 0 }
   0x9   :  { %18 = vsyncpa [#allocation5 + $0x1], 0 }
   0xa   :  { %19 = vsyncpa [#allocation8], 0 }
   0xb   :  { %20 = vsyncpa [#allocation11], 0 }
   0xc   :  { %21 = vsyncpa [#allocation14], 0 }
   0xd   :  { %22 = vsyncpa [#allocation6], 0 }
   0xe   :  { %24 = vsyncpa [#allocation6 + $0x1], 0  ;;  %s2608_s17 = smov 0   ;;  %s2610_s18 = smov 0  }
   0xf   :  { %s2612_s19 = smov 0   ;;  %s2614_s20 = smov 0  }
  0x10   :  { %s2616_s21 = smov 0   ;;  %s2618_s22 = smov 0  }
  0x11 LB: > { %3114 = sst [smem:[#allocation22_spill]] %s2510_s17  ;;  %s1899_s23 = sadd.s32 4294967295, %s2530_s22   ;;  %s2530_s22 = sphi %s2618_s22, %s30_s22   ;;  %s2526_s21 = sphi %s2616_s21, %s3157_s21   ;;  %s2522_s20 = sphi %s2614_s20, %s3156_s20   ;;  %s2518_s19 = sphi %s2612_s19, %s3155_s19   ;;  %s2514_s18 = sphi %s2610_s18, %s3154_s18   ;;  %s2510_s17 = sphi %s2608_s17, %s3153_s17  }
  0x12   : > { %s1900_s24 = sadd.s32 4294967294, %s2530_s22   ;;  %p64_p0 = scmp.ne.s32.totalorder %s2514_s18, %s2510_s17 }
  0x13   : > { %p2640_p1 = scmp.eq.s32.totalorder %s1899_s23, 0  ;;  %p2644_p2 = scmp.eq.s32.totalorder %s1899_s23, 1 }
  0x14   : > { %p316_p3 = scmp.eq.s32.totalorder %s1900_s24, 1  ;;  %p1901_p5 = scmp.ge.s32.totalorder %s2530_s22, 1 }
  0x15   : > { %s3115_s25 = scalar_select %p2640_p1, 1, 0 }
  0x16   : > { %s3117_s26 = scalar_select %p2644_p2, 1, 0 }
  0x17   : > { %3116 = sst [smem:[#allocation23_spill]] %s3115_s25  ;;  %p2650_p4 = por %p2640_p1, %p64_p0 }
  0x18   : > { %p2655_p6 = por %p316_p3, %p64_p0  ;;  %p323_p7 = scmp.lt.s32.totalorder %s2530_s22, 3 }
  0x19   : > { %s3118_s27 = scalar_select %p2650_p4, 1, 0 }
  0x1a   : > { %s3120_s28 = scalar_select %p2655_p6, 1, 0 }
  0x1b   : > { %3119 = sst [smem:[#allocation24_spill]] %s3118_s27  ;;  %s2660_s29 = sshll.u32 %s2522_s20, 7 }
  0x1c   : > { %3121 = sst [smem:[#allocation25_spill]] %s3120_s28  ;;  %p2662_p8 = pnand %p1901_p5, %p323_p7 }
  0x1d   : > { %s3124_s1 = sld [smem:[#allocation28_spill]]  ;;  %s2532_s15 = smov [#allocation7]  }
  0x1e   : > { %s3122_s30 = scalar_select %p2662_p8, 1, 0 }
  0x1f   : > { %s338_s16 = sshll.u32 %s2532_s15, 4  ;;  %p2119_p9 = pneg %p2662_p8  ;;  %s339_s16 = int_to_ptr.vmem [resolvable:$true] %s338_s16 }
  0x20   : > { %3123 = sst [smem:[#allocation26_spill]] %s3122_s30  ;;  %s2533_s24 = smov [#allocation10]  }
  0x21   : > { %p2677_p11 = pnand %p2119_p9, %p2650_p4  ;;  %p2683_p12 = pnand %p2119_p9, %p2640_p1 }
  0x22   : > { %s361_s12 = sshll.u32 %s2533_s24, 4  ;;  %s362_s12 = int_to_ptr.vmem [resolvable:$true] %s361_s12 }
  0x23   : > { %s2670_s14 = scalar_lea.hbm %s3124_s1, %s2660_s29  ;;  %p3094_p0 = pneg %p2677_p11 }
  0x24   : > { %s3125_s20 = scalar_select %p2677_p11, 1, 0 }
  0x25   : > { %s3126_s23 = scalar_select %p2683_p12, 1, 0 }
  0x26   : > { %s2234_s13 = scalar_lea.hbm %s2670_s14, 128  ;;  %s2239_s17 = scalar_lea.hbm %s3124_s1, 256 }
  0x27   : > { %p2235_p13 = scmp.ne.s32.totalorder %s2670_s14, %s2234_s13  ;;  %p2240_p7 = scmp.lt.u32.totalorder %s2670_s14, %s3124_s1 }
  0x28   : > { %p2241_p9 = scmp.lt.u32.totalorder %s2239_s17, %s2234_s13  ;;  %p2243_p6 = scmp.lt.u32.totalorder %s2234_s13, %s2670_s14 }
  0x29   : > { %p2237_p3 = pnand %p3094_p0, %p2235_p13 }
  0x2a   : > { %p2242_p10 = por %p2241_p9, %p2240_p7 }
  0x2b   : > { %p2238_p5 = pneg %p2237_p3 }
  0x2c   : > { %p2244_p1 = por %p2243_p6, %p2242_p10 }
  0x2e   : > { %p2245_p4 = pnand %p2244_p1, %p2238_p5 }
  0x30   : > { %2248 = shalt.err (!%p2245_p4)
}
  0x31   : > { %s2249_s24 = scalar_lea.vmem %s339_s16, 128  ;;  %p2257_p2 = scmp.lt.s32.totalorder %s339_s16, %s339_s16 }
  0x32   : > { %p2250_p8 = scmp.ne.s32.totalorder %s339_s16, %s2249_s24  ;;  %p2258_p12 = scmp.lt.s32.totalorder %s2249_s24, %s2249_s24 }
  0x34   : > { %p2252_p13 = pnand %p2250_p8, %p3094_p0  ;;  %p2259_p7 = por %p2258_p12, %p2257_p2 }
  0x36   : > { %p2253_p3 = pneg %p2252_p13 }
  0x38   : > { %p2260_p9 = pnand %p2259_p7, %p2253_p3 }
  0x3a   : > { %2263 = shalt.err (!%p2260_p9)
}
  0x3b   : > { %2122 = dma.hbm_to_vmem [thread:$0]  (!%p2677_p11), %s2670_s14, 128, %s339_s16, [#allocation8]  }
  0x3c   : > { %s2264_s17 = scalar_lea.hbm %s3076_s3, 512  ;;  %p3127_p4 = scmp.ne.s32.totalorder %s3126_s23, 0 }
  0x3d   : > { %p2265_p1 = scmp.ne.s32.totalorder %s3076_s3, %s2264_s17  ;;  %p2271_p10 = scmp.lt.u32.totalorder %s2264_s17, %s3076_s3 }
  0x3e   : > { %p2716_p6 = pneg %p3127_p4 }
  0x40   : > { %s3128_s15 = scalar_select %p2716_p6, 1, 0 }
  0x41   : > { %p2267_p2 = pnand %p2716_p6, %p2265_p1 }
  0x43   : > { %p2268_p8 = pneg %p2267_p2 }
  0x45   : > { %p2273_p12 = pnand %p2271_p10, %p2268_p8 }
  0x47   : > { %2276 = shalt.err (!%p2273_p12)
}
  0x48   : > { %s2277_s16 = scalar_lea.vmem %s362_s12, 512  ;;  %p2285_p7 = scmp.lt.s32.totalorder %s362_s12, %s362_s12 }
  0x49   : > { %p2278_p5 = scmp.ne.s32.totalorder %s362_s12, %s2277_s16  ;;  %p2286_p9 = scmp.lt.s32.totalorder %s2277_s16, %s2277_s16 }
  0x4b   : > { %p2280_p13 = pnand %p2278_p5, %p2716_p6  ;;  %p2287_p0 = por %p2286_p9, %p2285_p7 }
  0x4d   : > { %p2281_p3 = pneg %p2280_p13 }
  0x4f   : > { %p2288_p11 = pnand %p2287_p0, %p2281_p3 }
  0x51   : > { %2291 = shalt.err (!%p2288_p11)
}
  0x52   : > { %s2534_s10 = smov 128   ;;  %s2535_s11 = smov 8  }
  0x53   : > { %2128 = dma.hbm_to_vmem [thread:$0]  (!%p3127_p4), %s3076_s3, 512, %s362_s12, [#allocation11], %s2534_s10, %s2534_s10, %s2535_s11  }
  0x54   : > { %s2739_s14 = scalar_lea.hbm %s3075_s2, %s2660_s29  ;;  %s2536_s16 = smov [#allocation13]  }
  0x55   : > { %s393_s1 = sshll.u32 %s2536_s16, 4  ;;  %s2537_s9 = smov [#allocation9]   ;;  %s394_s1 = int_to_ptr.vmem [resolvable:$true] %s393_s1 }
  0x56   : > { %s351_s4 = sshll.u32 %s2537_s9, 4  ;;  %s2292_s27 = scalar_lea.hbm %s3080_s7, 512  ;;  %s352_s4 = int_to_ptr.vmem [resolvable:$true] %s351_s4 }
  0x57   : > { %p2293_p11 = scmp.ne.s32.totalorder %s3080_s7, %s2292_s27  ;;  %p2299_p2 = scmp.lt.u32.totalorder %s2292_s27, %s3080_s7 }
  0x59   : > { %p2295_p0 = pnand %p2293_p11, %p2716_p6 }
  0x5b   : > { %p2296_p1 = pneg %p2295_p0 }
  0x5d   : > { %p2301_p8 = pnand %p2299_p2, %p2296_p1 }
  0x5f   : > { %2304 = shalt.err (!%p2301_p8)
}
  0x60   : > { %s2305_s28 = scalar_lea.vmem %s394_s1, 512  ;;  %p2313_p13 = scmp.lt.s32.totalorder %s394_s1, %s394_s1 }
  0x61   : > { %p2306_p10 = scmp.ne.s32.totalorder %s394_s1, %s2305_s28  ;;  %p2314_p3 = scmp.lt.s32.totalorder %s2305_s28, %s2305_s28 }
  0x63   : > { %p2308_p12 = pnand %p2306_p10, %p2716_p6  ;;  %p2315_p7 = por %p2314_p3, %p2313_p13 }
  0x65   : > { %p2309_p5 = pneg %p2308_p12 }
  0x67   : > { %p2316_p9 = pnand %p2315_p7, %p2309_p5 }
  0x69   : > { %2319 = shalt.err (!%p2316_p9)
}
  0x6a   : > { %2134 = dma.hbm_to_vmem [thread:$0]  (!%p3127_p4), %s3080_s7, 512, %s394_s1, [#allocation14], %s2534_s10, %s2534_s10, %s2535_s11  }
  0x6b   : > { %s2320_s9 = scalar_lea.hbm %s2739_s14, 128  ;;  %p3129_p0 = scmp.ne.s32.totalorder %s3125_s20, 0 }
  0x6c   : > { %p2321_p11 = scmp.ne.s32.totalorder %s2739_s14, %s2320_s9  ;;  %s2325_s30 = scalar_lea.hbm %s3075_s2, 256 }
  0x6d   : > { %p3130_p1 = pneg %p3129_p0  ;;  %p2326_p10 = scmp.lt.u32.totalorder %s2739_s14, %s3075_s2 }
  0x6e   : > { %p2327_p12 = scmp.lt.u32.totalorder %s2325_s30, %s2320_s9  ;;  %p2329_p13 = scmp.lt.u32.totalorder %s2320_s9, %s2739_s14 }
  0x6f   : > { %p2323_p2 = pnand %p2321_p11, %p3130_p1 }
  0x70   : > { %p2328_p5 = por %p2327_p12, %p2326_p10 }
  0x71   : > { %p2324_p8 = pneg %p2323_p2 }
  0x72   : > { %p2330_p3 = por %p2329_p13, %p2328_p5 }
  0x74   : > { %p2331_p7 = pnand %p2330_p3, %p2324_p8 }
  0x76   : > { %2334 = shalt.err (!%p2331_p7)
}
  0x77   : > { %s2335_s1 = scalar_lea.vmem %s352_s4, 128  ;;  %p3131_p11 = pmov %p3130_p1 }
  0x78   : > { %p2336_p9 = scmp.ne.s32.totalorder %s352_s4, %s2335_s1  ;;  %p2343_p4 = scmp.lt.s32.totalorder %s352_s4, %s352_s4 }
  0x79   : > { %p2344_p6 = scmp.lt.s32.totalorder %s2335_s1, %s2335_s1 }
  0x7a   : > { %p2338_p1 = pnand %p2336_p9, %p3131_p11 }
  0x7b   : > { %p2345_p10 = por %p2344_p6, %p2343_p4 }
  0x7c   : > { %p2339_p2 = pneg %p2338_p1 }
  0x7e   : > { %p2346_p12 = pnand %p2345_p10, %p2339_p2 }
  0x80   : > { %2349 = shalt.err (!%p2346_p12)
}
  0x81   : > { %2125 = dma.hbm_to_vmem [thread:$0]  (!%p3129_p0), %s2739_s14, 128, %s352_s4, [#allocation8]  }
  0x82   : > { %s2538_s16 = smov [#allocation12]   ;;  %s2539_s17 = smov [#allocation15]  }
  0x83   : > { %s377_s12 = sshll.u32 %s2538_s16, 4  ;;  %s407_s28 = sshll.u32 %s2539_s17, 4  ;;  %s378_s12 = int_to_ptr.vmem [resolvable:$true] %s377_s12  ;;  %s408_s28 = int_to_ptr.vmem [resolvable:$true] %s407_s28 }
  0x84   : > { %s2350_s9 = scalar_lea.hbm %s3078_s5, 512  ;;  %p3132_p6 = scmp.ne.s32.totalorder %s3128_s15, 0 }
  0x85   : > { %p2351_p4 = scmp.ne.s32.totalorder %s3078_s5, %s2350_s9  ;;  %p2357_p0 = scmp.lt.u32.totalorder %s2350_s9, %s3078_s5 }
  0x87   : > { %p2353_p8 = pnand %p2351_p4, %p3132_p6 }
  0x89   : > { %p2354_p5 = pneg %p2353_p8 }
  0x8b   : > { %p2359_p13 = pnand %p2357_p0, %p2354_p5 }
  0x8d   : > { %2362 = shalt.err (!%p2359_p13)
}
  0x8e   : > { %s2363_s4 = scalar_lea.vmem %s378_s12, 512  ;;  %p2371_p11 = scmp.lt.s32.totalorder %s378_s12, %s378_s12 }
  0x8f   : > { %p2364_p3 = scmp.ne.s32.totalorder %s378_s12, %s2363_s4  ;;  %p2372_p1 = scmp.lt.s32.totalorder %s2363_s4, %s2363_s4 }
  0x91   : > { %p2366_p7 = pnand %p2364_p3, %p3132_p6  ;;  %p2373_p2 = por %p2372_p1, %p2371_p11 }
  0x93   : > { %p2367_p9 = pneg %p2366_p7 }
  0x95   : > { %p2374_p10 = pnand %p2373_p2, %p2367_p9 }
  0x97   : > { %2377 = shalt.err (!%p2374_p10)
}
  0x98   : > { %p3133_p12 = scmp.ne.s32.totalorder %s3126_s23, 0  ;;  %s2378_s16 = scalar_lea.hbm %s3081_s8, 16 }
  0x99   : > { %p2379_p4 = scmp.ne.s32.totalorder %s3081_s8, %s2378_s16  ;;  %p2385_p0 = scmp.lt.u32.totalorder %s2378_s16, %s3081_s8 }
  0x9a   : > { %2131 = dma.hbm_to_vmem [thread:$0]  (!%p3133_p12), %s3078_s5, 512, %s378_s12, [#allocation11], %s2534_s10, %s2534_s10, %s2535_s11  }
  0x9b   : > { %p2381_p8 = pnand %p2379_p4, %p3132_p6 }
  0x9d   : > { %p2382_p5 = pneg %p2381_p8 }
  0x9f   : > { %p2387_p13 = pnand %p2385_p0, %p2382_p5 }
  0xa1   : > { %2390 = shalt.err (!%p2387_p13)
}
  0xa2   : > { %s2391_s25 = scalar_lea.vmem %s408_s28, 16  ;;  %s2398_s10 = scalar_lea.vmem %s408_s28, 32 }
  0xa3   : > { %p2392_p3 = scmp.ne.s32.totalorder %s408_s28, %s2391_s25  ;;  %p2399_p11 = scmp.lt.s32.totalorder %s408_s28, %s408_s28 }
  0xa4   : > { %p2400_p1 = scmp.lt.s32.totalorder %s2398_s10, %s2391_s25 }
  0xa5   : > { %p2394_p7 = pnand %p2392_p3, %p3132_p6 }
  0xa6   : > { %p2401_p2 = por %p2400_p1, %p2399_p11 }
  0xa7   : > { %p2395_p9 = pneg %p2394_p7 }
  0xa9   : > { %p2402_p10 = pnand %p2401_p2, %p2395_p9 }
  0xab   : > { %2405 = shalt.err (!%p2402_p10)
}
  0xac   : > { %2137 = dma.hbm_to_vmem [thread:$0]  (!%p3133_p12), %s3081_s8, 16, %s408_s28, [#allocation14]  }
  0xad   : > { %s51_s15 = sadd.s32 1, %s2518_s19  ;;  %s42_s27 = sadd.s32 1, %s2526_s21 }
  0xae   : > { %p58_p6 = scmp.ne.s32.totalorder %s2518_s19, %s2514_s18  ;;  %p44_p4 = scmp.ge.s32.totalorder %s42_s27, 2 }
  0xaf   : > { %p59_p8 = scmp.eq.s32.totalorder %s2530_s22, 0  ;;  %p3134_p5 = scmp.ne.s32.totalorder %s3117_s26, 0 }
  0xb0   : > { %p2150_p13 = scmp.lt.s32.totalorder %s2530_s22, 2  ;;  %s3159_s27 = smov (%p44_p4, %s42_s27), 0 }
  0xb1   : > { %p2827_p0 = por %p3134_p5, %p58_p6  ;;  %p60_p3 = por %p59_p8, %p58_p6 }
  0xb2   : > { %s424_s20 = sand.u32 1, %s2518_s19   ;;  %s46_s30 = ssub.s32 %s2526_s21, %s3159_s27 }
  0xb3   : > { %p49_p7 = scmp.eq.s32.totalorder %s46_s30, 0  ;;  %s1909_s28 = sshll.u32 %s424_s20, 3 }
  0xb4   : > { %s1910_s4 = sshll.u32 %s2526_s21, 7  ;;  %s3136_s1 = sld [smem:[#allocation27_spill]] }
  0xb5   : > { %s2839_s14 = scalar_select %p49_p7, %s2518_s19, %s51_s15  }
  0xb6   : > { %s428_s16 = scalar_lea.vmem [#allocation4], %s1909_s28  ;;  %p2850_p12 = pnand %p2150_p13, %p60_p3 }
  0xb7   : > { %s436_s17 = sshll.u32 %s428_s16, 4  ;;  %s425_s6 = scalar_lea.sflag [#allocation5], %s424_s20  ;;  %s2846_s17 = int_to_ptr.vmem [resolvable:$true] %s436_s17 }
  0xb8   : > { %p2408_p11 = pneg %p2850_p12 }
  0xba   : > { %s2844_s26 = scalar_lea.hbm %s3136_s1, %s1910_s4  ;;  %s2411_s11 = scalar_lea.hbm %s3136_s1, 256 }
  0xbb   : > { %s2406_s9 = scalar_lea.hbm %s2844_s26, 128  ;;  %p2412_p10 = scmp.lt.u32.totalorder %s2844_s26, %s3136_s1 }
  0xbc   : > { %p2407_p9 = scmp.ne.s32.totalorder %s2844_s26, %s2406_s9  ;;  %p2413_p6 = scmp.lt.u32.totalorder %s2411_s11, %s2406_s9 }
  0xbd   : > { %p2415_p8 = scmp.lt.u32.totalorder %s2406_s9, %s2844_s26 }
  0xbe   : > { %p2409_p1 = pnand %p2408_p11, %p2407_p9  ;;  %p2414_p4 = por %p2413_p6, %p2412_p10 }
  0xc0   : > { %p2410_p2 = pneg %p2409_p1  ;;  %p2416_p5 = por %p2415_p8, %p2414_p4 }
  0xc2   : > { %p2417_p13 = pnand %p2416_p5, %p2410_p2 }
  0xc4   : > { %2420 = shalt.err (!%p2417_p13)
}
  0xc5   : > { %s2421_s20 = scalar_lea.vmem %s2846_s17, 128  ;;  %s2540_s30 = smov [#allocation4]  }
  0xc6   : > { %p2422_p3 = scmp.ne.s32.totalorder %s2846_s17, %s2421_s20  ;;  %s2426_s28 = sshll.u32 %s2540_s30, 4  ;;  %s2427_s28 = int_to_ptr.vmem [resolvable:$false] %s2426_s28 }
  0xc7   : > { %s2428_s4 = scalar_lea.vmem %s2427_s28, 256  ;;  %p2429_p1 = scmp.lt.s32.totalorder %s2846_s17, %s2427_s28 }
  0xc8   : > { %p2424_p7 = pnand %p2422_p3, %p2408_p11  ;;  %p2430_p10 = scmp.lt.s32.totalorder %s2428_s4, %s2421_s20 }
  0xca   : > { %p2425_p9 = pneg %p2424_p7  ;;  %p2431_p6 = por %p2430_p10, %p2429_p1 }
  0xcc   : > { %p2432_p4 = pnand %p2431_p6, %p2425_p9 }
  0xce   : > { %2435 = shalt.err (!%p2432_p4)
}
  0xcf   : > { %2141 = dma.hbm_to_vmem [thread:$0]  (!%p2850_p12), %s2844_s26, 128, %s2846_s17, %s425_s6  }
  0xd0   : > { %s3138_s13 = sld [smem:[#allocation26_spill]] }
  0xd6   : > { %p3139_p2 = scmp.ne.s32.totalorder %s3138_s13, 0 }
  0xd7   : > { %s3140_s24 = sld [smem:[#allocation24_spill]] (!%p3139_p2)  ;;  %s2882_s16 = sand.u32 (!%p3139_p2), 1, %s2514_s18  }
  0xd8   : > { %445 = sbr.rel (%p3139_p2) target bundleno = 2829 (0xb0d), region = 64  ;;  %s1912_s9 = sshll.u32 (!%p3139_p2), %s2882_s16, 3 }
  0xd9   : > { %s448_s25 = scalar_lea.sflag (!%p3139_p2), [#allocation5], %s2882_s16  ;;  %s2888_s10 = scalar_lea.vmem (!%p3139_p2), [#allocation4], %s1912_s9 }
  0xdd   : > { %p3141_p11 = scmp.ne.s32.totalorder (!%p3139_p2), %s3140_s24, 0 }
  0xdf   : > { %2489 = dma.done.wait (%p3141_p11), %s448_s25, 128  }
  0xe0   : > { %2491 = vsyncadd (%p3141_p11), %s448_s25, 4294967168 }
  0xe1   : > { %2493 = dma.done.wait (%p3141_p11), [#allocation8], 256  }
  0xe2   : > { %2495 = vsyncadd (%p3141_p11), [#allocation8], 4294967040  ;;  %s3142_s26 = sld [smem:[#allocation23_spill]] }
  0xe8   : > { %p3143_p12 = scmp.ne.s32.totalorder %s3142_s26, 0 }
  0xea   : > { %2497 = dma.done.wait (%p3143_p12), [#allocation11], 1024  }
  0xeb   : > { %2499 = vsyncadd (%p3143_p12), [#allocation11], 4294966272 }
  0xec   : > { %2501 = dma.done.wait (%p3143_p12), [#allocation14], 528  }
  0xed   : > { %2503 = vsyncadd (%p3143_p12), [#allocation14], 4294966768  ;;  %v2541_v0 = vmov 0.0|0.0   ;;  %vm2542_vm0 = vmmov 0   ;;  %v2543_v1 = vmov 0.0   ;;  %v520_v2 = vld [vmem:[#allocation12] sm:$0xff] }
  0xee   : > { %2077 = vmatprep.subr.bf16.mxu0 %v2541_v0  ;;  %1992 = vmatprep.mubr.msk.f32.mxu0 %vm2542_vm0, %v2543_v1  ;;  %v521_v3 = vld [vmem:[#allocation12 + $0x8] sm:$0xff]  ;;  %v522_v4 = vld [vmem:[#allocation12 + $0x10] sm:$0xff]  ;;  %v523_v6 = vld [vmem:[#allocation12 + $0x18] sm:$0xff]  ;;  %vm531_vm1 = vcmask 261120   ;;  %s3144_s6 = sld [smem:[#allocation30_spill]]  ;;  %s3145_s15 = sld [smem:[#allocation29_spill]] }
  0xef   : > { %2083 = vmatprep.subr.bf16.mxu1 %v2541_v0  ;;  %2003 = vmatprep.mubr.msk.f32.mxu1 %vm2542_vm0, %v2543_v1  ;;  %v2078_v5 = vpack.c.bf16 %v521_v3, %v520_v2  ;;  %v2081_v7 = vpack.c.bf16 %v523_v6, %v522_v4  ;;  %v605_v8 = vld [vmem:[#allocation13] sm:$0xff]  ;;  %v606_v9 = vld [vmem:[#allocation13 + $0x8] sm:$0xff]  ;;  %v518_v13 = vld [vmem:[#allocation7] sm:$0xff]  ;;  %vm779_vm2 = vcmask 64512   ;;  %s2544_s20 = smov 120   ;;  %s2545_s30 = smov 112  }
  0xf0   : > { %v692_v10 = vld [vmem:[#allocation10] sm:$0xff]  ;;  %v693_v11 = vld [vmem:[#allocation10 + $0x8] sm:$0xff]  ;;  %v2084_v12 = vpack.c.bf16 %v606_v9, %v605_v8  ;;  %v694_v15 = vld [vmem:[#allocation10 + $0x10] sm:$0xff]  ;;  %s2546_s28 = smov 104   ;;  %s3146_s24 = sld [smem:[#allocation31_spill]] }
  0xf1   : > { %2079 = vmatpush3.bf16.msra.mxu0 %v2078_v5  ;;  %v2090_v14 = vpack.c.bf16 %v693_v11, %v692_v10  ;;  %v695_v16 = vld [vmem:[#allocation10 + $0x18] sm:$0xff]  ;;  %v691_v18 = vld [vmem:[%s2888_s10] sm:$0xff]  ;;  %v607_v19 = vld [vmem:[#allocation13 + $0x10] sm:$0xff]  ;;  %s3148_s13 = sld [smem:[#allocation33_spill]]  ;;  %s1744_s10 = scalar_lea.sflag [#allocation6], %s2882_s16 }
  0xf2   : > { %2080 = vmatprep.subr.bf16.mxu0 %v2541_v0  ;;  %2085 = vmatpush3.bf16.msra.mxu1 %v2084_v12  ;;  %v2093_v17 = vpack.c.bf16 %v695_v16, %v694_v15  ;;  %v608_v20 = vld [vmem:[#allocation13 + $0x18] sm:$0xff]  ;;  %v1920_v32 = vld [vmem:[#allocation15] ss:$0 sm:$0xff] }
  0xf3   : > { %2086 = vmatprep.subr.bf16.mxu1 %v2541_v0  ;;  %v2087_v21 = vpack.c.bf16 %v608_v20, %v607_v19  ;;  %v519_v22 = vld [vmem:[#allocation9] sm:$0xff] }
  0xf4   : > { %v1918_v23 = vld [vmem:[%s3144_s6] ss:$0 sm:$0xff] }
  0xf5   : > { %2082 = vmatpush3.bf16.msra.mxu0 %v2081_v7  ;;  %v1922_v27 = vld [vmem:[%s3145_s15] ss:$0 sm:$0xff]  ;;  %s3147_s15 = sld [smem:[#allocation32_spill]] }
  0xf6   : > { %2089 = vmatprep.subr.bf16.mxu0 %v2541_v0  ;;  %2088 = vmatpush3.bf16.msra.mxu1 %v2087_v21  ;;  %v1107_v58 = vld [vmem:[%s3146_s24 + $0x8] sm:$0xff]  ;;  %v940_v63 = vld [vmem:[%s3146_s24] sm:$0xff] }
  0xf7   : > { %2017 = vmatprep.subr.mxu1 %v2543_v1  ;;  %s3023_s25 = scalar_lea.hbm %s3148_s13, %s2660_s29 }
  0xf8   : > { %1993 = vmatmul.mubr.msk.f32.vlgmr.msra.gmra.mrb[0].mxu0 %vm531_vm1, %v518_v13 }
  0xf9   : > { %2091 = vmatpush3.bf16.msra.mxu0 %v2090_v14  ;;  %2014 = vmatprep.mubr.msk.f32.mxu0 %vm2542_vm0, %v2543_v1 }
  0xfa   : > { %2092 = vmatprep.subr.bf16.mxu0 %v2541_v0  ;;  %2004 = vmatmul.mubr.msk.f32.vlgmr.msra.gmra.mrb[0].mxu1 %vm531_vm1, %v519_v22 }
  0xfb   : > { %2019 = vmatprep.mubr.msk.f32.mxu1 %vm2542_vm0, %v2543_v1 }
  0xfd   : > { %2094 = vmatpush3.bf16.msra.mxu0 %v2093_v17 }
  0xfe   : > { %2027 = vmatprep.subr.mxu0 %v2543_v1 }
 0x100   : > { %2015 = vmatmul.mubr.msk.f32.vlgmr.msra.gmra.mrb[2].mxu0 %vm531_vm1, %v691_v18 }
 0x101   : > { %2029 = vmatprep.mubr.msk.f32.mxu0 %vm2542_vm0, %v2543_v1 }
 0x1cb   : > { %v601_v24 = vpop.f32.mrb[0].mxu0 }
 0x1cc   : > { %v602_v25 = vadd.f32 %v1918_v23, %v601_v24  ;;  %v1994_v26 = vpop.f32.mrb[1].mxu0 }
 0x1cd   : > { %v685_v33 = vpop.f32.mrb[0].mxu1  ;;  %v1419_v26 = vld [vmem:[%s3146_s24 + $0x10] sm:$0xff] }
 0x1ce   : > { %689 = vst.msk [vmem:[#allocation2] sm:$0xff] %vm531_vm1, %v602_v25  ;;  %v686_v34 = vadd.f32 %v1920_v32, %v685_v33  ;;  %v2005_v35 = vpop.f32.mrb[1].mxu1 }
 0x1d0   : > { %690 = vst.msk [vmem:[#allocation3] sm:$0xff] %vm531_vm1, %v686_v34 }
 0x1d3   : > { %v773_v28 = vpop.f32.mrb[2].mxu0 }
 0x1d4   : > { %v2016_v29 = vpop.f32.mrb[3].mxu0  ;;  %v2929_v31 = vadd.f32 %v1922_v27, %v773_v28 }
 0x1d5   : > { %v777_v30 = vld [vmem:[#allocation2] sm:$0xff] }
 0x1d6   : > { %943 = vrot.lane.b32.xlu0 %v777_v30, %s2544_s20  ;;  %2018 = vmatpush3.xpose.msk.msra.mxu1 %vm779_vm2, %v777_v30 }
 0x1d7   : > { %2022 = vmatprep.subr.mxu1 %v2543_v1  ;;  %v2946_v38 = vld [vmem:[#allocation3] sm:$0xff] }
 0x1d9   : > { %2020 = vmatmul.mubr.msk.f32.vlgmr.msra.gmra.mrb[2].mxu1 %vm779_vm2, %v2929_v31 }
 0x1da   : > { %941 = vrot.lane.b32.xlu0 %v2929_v31, %s2544_s20  ;;  %2024 = vmatprep.mubr.msk.f32.mxu1 %vm2542_vm0, %v2543_v1 }
 0x1db   : > { %2023 = vmatpush3.msra.mxu1 %v2946_v38 }
 0x1dc   : > { %2032 = vmatprep.subr.mxu1 %v2543_v1 }
 0x248   : > { %v944_v36 = vpop.permute.xlu0 %943 }
 0x249   : > { %2028 = vmatpush3.xpose.msk.msra.mxu0 %vm779_vm2, %v944_v36 }
 0x24a   : > { %2037 = vmatprep.subr.mxu0 %v2543_v1 }
 0x24c   : > { %v942_v37 = vpop.permute.xlu0 %941 }
 0x24d   : > { %2030 = vmatmul.mubr.msk.f32.vlgmr.msra.gmra.mrb[4].mxu0 %vm779_vm2, %v942_v37 }
 0x24e   : > { %2039 = vmatprep.mubr.msk.f32.mxu0 %vm2542_vm0, %v2543_v1  ;;  %2038 = vmatpush3.msra.mxu0 %v1107_v58 }
 0x24f   : > { %2047 = vmatprep.subr.mxu0 %v2543_v1 }
 0x2ac   : > { %v852_v39 = vpop.f32.mrb[2].mxu1 }
 0x2ad   : > { %v2021_v40 = vpop.f32.mrb[3].mxu1  ;;  %v856_v41 = vsel %vm779_vm2, %v852_v39, -inf }
 0x2ae   : > { %857 = vmax.xlane.f32.xlu1 %v856_v41 }
 0x320   : > { %v1015_v42 = vpop.f32.mrb[4].mxu0 }
 0x321   : > { %v2031_v43 = vpop.f32.mrb[5].mxu0  ;;  %v1019_v44 = vsel %vm779_vm2, %v1015_v42, -inf }
 0x322   : > { %1020 = vmax.xlane.f32.xlu1 %v1019_v44 }
 0x33b   : > { %v858_v45 = vpop.xlane.xlu1 %857 }
 0x33c   : > { %v859_v46 = vsub.f32 %v852_v39, %v858_v45 }
 0x33e   : > { %v860_v47 = vmul.f32 1.442695, %v859_v46 }
 0x340   : > { %2218 = vpow2.f32 %v860_v47  ;;  %v1940_v47 = vld [vmem:[%s3147_s15] ss:$0 sm:$0xff] }
 0x34a   : > { %v2219_v48 = vpop.eup %2218 }
 0x34b   : > { %v862_v49 = vsel %vm779_vm2, %v2219_v48, 0.0 }
 0x34c   : > { %863 = vadd.xlane.f32.xlu0 %v862_v49 }
 0x362   : > { %1343 = vrot.lane.b32.xlu0 %v2946_v38, %s2545_s30 }
 0x366   : > { %1496 = vrot.lane.b32.xlu0 %v777_v30, %s2546_s28 }
 0x3af   : > { %v1021_v50 = vpop.xlane.xlu1 %1020 }
 0x3b0   : > { %v1022_v51 = vsub.f32 %v1015_v42, %v1021_v50 }
 0x3b2   : > { %v1023_v52 = vmul.f32 1.442695, %v1022_v51 }
 0x3b4   : > { %2220 = vpow2.f32 %v1023_v52 }
 0x3be   : > { %v2221_v53 = vpop.eup %2220 }
 0x3bf   : > { %v1025_v54 = vsel %vm779_vm2, %v2221_v53, 0.0 }
 0x3c0   : > { %1026 = vadd.xlane.f32.xlu1 %v1025_v54 }
 0x3d1   : > { %1031 = vrot.lane.b32.xlu1 %v2946_v38, %s2544_s20  ;;  %s513_s20 = scalar_lea.vmem [#allocation16], %s1912_s9  ;;  %s2547_s9 = smov [#allocation16]  }
 0x3d2   : > { %s2440_s17 = sshll.u32 %s2547_s9, 4  ;;  %s2441_s17 = int_to_ptr.vmem [resolvable:$false] %s2440_s17 }
 0x3d3   : > { %s2442_s0 = scalar_lea.vmem %s2441_s17, 256 }
 0x3d5   : > { %1256 = vrot.lane.b32.xlu1 %v777_v30, %s2545_s30 }
 0x3d9   : > { %v864_v55 = vpop.xlane.xlu0 %863  ;;  %1254 = vrot.lane.b32.xlu1 %v2929_v31, %s2545_s30  ;;  %s1758_s30 = sshll.u32 %s513_s20, 4  ;;  %s3025_s30 = int_to_ptr.vmem [resolvable:$true] %s1758_s30 }
 0x3da   : > { %2222 = vrcp.f32 %v864_v55  ;;  %s2436_s26 = scalar_lea.vmem %s3025_s30, 128  ;;  %p2443_p3 = scmp.lt.s32.totalorder %s3025_s30, %s2441_s17 }
 0x3db   : > { %p2437_p8 = scmp.ne.s32.totalorder %s3025_s30, %s2436_s26  ;;  %p2444_p7 = scmp.lt.s32.totalorder %s2442_s0, %s2436_s26 }
 0x3dd   : > { %v1344_v2 = vpop.permute.xlu0 %1343  ;;  %p2438_p5 = pnand %p2437_p8, %p2827_p0  ;;  %p2445_p9 = por %p2444_p7, %p2443_p3 }
 0x3df   : > { %p2439_p13 = pneg %p2438_p5 }
 0x3e1   : > { %v1497_v21 = vpop.permute.xlu0 %1496  ;;  %p2446_p1 = pnand %p2445_p9, %p2439_p13 }
 0x3e4   : > { %v2223_v56 = vpop.eup %2222 }
 0x3e5   : > { %v866_v57 = vmul.f32 %v2223_v56, %v2219_v48 }
 0x3e7   : > { %2025 = vmatmul.mubr.msk.f32.vlgmr.msra.gmra.mrb[4].mxu1 %vm779_vm2, %v866_v57 }
 0x3e8   : > { %2034 = vmatprep.mubr.msk.f32.mxu1 %vm2542_vm0, %v2543_v1 }
 0x44d   : > { %v1027_v59 = vpop.xlane.xlu1 %1026 }
 0x44e   : > { %2224 = vrcp.f32 %v1027_v59 }
 0x451   : > { %v1032_v60 = vpop.permute.xlu1 %1031 }
 0x452   : > { %2033 = vmatpush3.msra.mxu1 %v1032_v60 }
 0x453   : > { %2042 = vmatprep.subr.mxu1 %v2543_v1 }
 0x455   : > { %v1257_v4 = vpop.permute.xlu1 %1256 }
 0x458   : > { %v2225_v61 = vpop.eup %2224 }
 0x459   : > { %v1029_v62 = vmul.f32 %v2225_v61, %v2221_v53  ;;  %v1255_v7 = vpop.permute.xlu1 %1254 }
 0x45b   : > { %2035 = vmatmul.mubr.msk.f32.vlgmr.msra.gmra.mrb[6].mxu1 %vm779_vm2, %v1029_v62 }
 0x45c   : > { %2043 = vmatpush3.msra.mxu1 %v940_v63  ;;  %2044 = vmatprep.mubr.msk.f32.mxu1 %vm2542_vm0, %v2543_v1 }
 0x45d   : > { %2052 = vmatprep.subr.mxu1 %v2543_v1 }
 0x4ba   : > { %v936_v0 = vpop.f32.mrb[4].mxu1 }
 0x4bb   : > { %v2026_v3 = vpop.f32.mrb[5].mxu1  ;;  %2045 = vmatmul.mubr.msk.f32.vlgmr.msra.gmra.mrb[8].mxu1 %vm779_vm2, %v936_v0 }
 0x4bc   : > { %2053 = vmatpush3.msra.mxu1 %v1344_v2  ;;  %2054 = vmatprep.mubr.msk.f32.mxu1 %vm2542_vm0, %v2543_v1 }
 0x4bd   : > { %2062 = vmatprep.subr.mxu1 %v2543_v1 }
 0x52e   : > { %v1103_v5 = vpop.f32.mrb[6].mxu1 }
 0x52f   : > { %v2036_v6 = vpop.f32.mrb[7].mxu1  ;;  %2040 = vmatmul.mubr.msk.f32.vlgmr.msra.gmra.mrb[6].mxu0 %vm779_vm2, %v1103_v5 }
 0x530   : > { %2048 = vmatpush3.xpose.msk.msra.mxu0 %vm779_vm2, %v1257_v4  ;;  %2049 = vmatprep.mubr.msk.f32.mxu0 %vm2542_vm0, %v2543_v1 }
 0x531   : > { %2057 = vmatprep.subr.mxu0 %v2543_v1 }
 0x533   : > { %2050 = vmatmul.mubr.msk.f32.vlgmr.msra.gmra.mrb[8].mxu0 %vm779_vm2, %v1255_v7 }
 0x534   : > { %2059 = vmatprep.mubr.msk.f32.mxu0 %vm2542_vm0, %v2543_v1  ;;  %2058 = vmatpush3.msra.mxu0 %v1419_v26 }
 0x535   : > { %2067 = vmatprep.subr.mxu0 %v2543_v1 }
 0x58e   : > { %v1250_v8 = vpop.f32.mrb[8].mxu1 }
 0x58f   : > { %v2046_v9 = vpop.f32.mrb[9].mxu1 }
 0x602   : > { %v1177_v10 = vpop.f32.mrb[6].mxu0 }
 0x603   : > { %v1251_v11 = vadd.f32 %v1250_v8, %v1177_v10  ;;  %v2041_v12 = vpop.f32.mrb[7].mxu0 }
 0x606   : > { %v1328_v13 = vpop.f32.mrb[8].mxu0 }
 0x607   : > { %v2051_v14 = vpop.f32.mrb[9].mxu0  ;;  %v1332_v15 = vsel %vm779_vm2, %v1328_v13, -inf }
 0x608   : > { %1333 = vmax.xlane.f32.xlu1 %v1332_v15 }
 0x695   : > { %v1334_v16 = vpop.xlane.xlu1 %1333 }
 0x696   : > { %v1335_v17 = vsub.f32 %v1328_v13, %v1334_v16 }
 0x698   : > { %v1336_v18 = vmul.f32 1.442695, %v1335_v17 }
 0x69a   : > { %2226 = vpow2.f32 %v1336_v18 }
 0x6a4   : > { %v2227_v19 = vpop.eup %2226 }
 0x6a5   : > { %v1338_v20 = vsel %vm779_vm2, %v2227_v19, 0.0 }
 0x6a6   : > { %1339 = vadd.xlane.f32.xlu0 %v1338_v20 }
 0x6bc   : > { %1494 = vrot.lane.b32.xlu0 %v2929_v31, %s2546_s28 }
 0x733   : > { %v1340_v22 = vpop.xlane.xlu0 %1339 }
 0x734   : > { %2228 = vrcp.f32 %v1340_v22 }
 0x737   : > { %v1495_v25 = vpop.permute.xlu0 %1494 }
 0x73e   : > { %v2229_v23 = vpop.eup %2228 }
 0x73f   : > { %v1342_v24 = vmul.f32 %v2229_v23, %v2227_v19 }
 0x741   : > { %2055 = vmatmul.mubr.msk.f32.vlgmr.msra.gmra.mrb[10].mxu1 %vm779_vm2, %v1342_v24 }
 0x742   : > { %2063 = vmatpush3.xpose.msk.msra.mxu1 %vm779_vm2, %v1497_v21  ;;  %2064 = vmatprep.mubr.msk.f32.mxu1 %vm2542_vm0, %v2543_v1 }
 0x743   : > { %2072 = vmatprep.subr.mxu1 %v2543_v1 }
 0x745   : > { %2065 = vmatmul.mubr.msk.f32.vlgmr.msra.gmra.mrb[12].mxu1 %vm779_vm2, %v1495_v25 }
 0x746   : > { %2074 = vmatprep.mubr.msk.f32.mxu1 %vm2542_vm0, %v2543_v1 }
 0x814   : > { %v1415_v27 = vpop.f32.mrb[10].mxu1 }
 0x815   : > { %v2056_v28 = vpop.f32.mrb[11].mxu1  ;;  %2060 = vmatmul.mubr.msk.f32.vlgmr.msra.gmra.mrb[10].mxu0 %vm779_vm2, %v1415_v27 }
 0x816   : > { %2069 = vmatprep.mubr.msk.f32.mxu0 %vm2542_vm0, %v2543_v1  ;;  %v1659_v1 = vld [vmem:[%s3146_s24 + $0x18] sm:$0xff] }
 0x817   : > { %2073 = vmatpush3.msra.mxu1 %v1659_v1 }
 0x818   : > { %v1568_v29 = vpop.f32.mrb[12].mxu1 }
 0x819   : > { %v2066_v30 = vpop.f32.mrb[13].mxu1  ;;  %v1572_v31 = vsel %vm779_vm2, %v1568_v29, -inf }
 0x81a   : > { %1573 = vmax.xlane.f32.xlu0 %v1572_v31 }
 0x8a7   : > { %v1574_v32 = vpop.xlane.xlu0 %1573 }
 0x8a8   : > { %v1575_v33 = vsub.f32 %v1568_v29, %v1574_v32 }
 0x8aa   : > { %v1576_v34 = vmul.f32 1.442695, %v1575_v33 }
 0x8ac   : > { %2230 = vpow2.f32 %v1576_v34 }
 0x8b6   : > { %v2231_v35 = vpop.eup %2230 }
 0x8b7   : > { %v1578_v36 = vsel %vm779_vm2, %v2231_v35, 0.0 }
 0x8b8   : > { %1579 = vadd.xlane.f32.xlu1 %v1578_v36 }
 0x8c9   : > { %1583 = vrot.lane.b32.xlu1 %v2946_v38, %s2546_s28 }
 0x8e8   : > { %v1489_v37 = vpop.f32.mrb[10].mxu0 }
 0x8e9   : > { %v1493_v39 = vadd.f32 %v1489_v37, %v1251_v11  ;;  %v2061_v40 = vpop.f32.mrb[11].mxu0 }
 0x945   : > { %v1580_v41 = vpop.xlane.xlu1 %1579 }
 0x946   : > { %2232 = vrcp.f32 %v1580_v41 }
 0x949   : > { %v1584_v42 = vpop.permute.xlu1 %1583 }
 0x94a   : > { %2068 = vmatpush3.msra.mxu0 %v1584_v42 }
 0x950   : > { %v2233_v43 = vpop.eup %2232 }
 0x951   : > { %v1582_v44 = vmul.f32 %v2233_v43, %v2231_v35 }
 0x953   : > { %2070 = vmatmul.mubr.msk.f32.vlgmr.msra.gmra.mrb[12].mxu0 %vm779_vm2, %v1582_v44 }
 0xa26   : > { %v1655_v38 = vpop.f32.mrb[12].mxu0 }
 0xa27   : > { %v2071_v45 = vpop.f32.mrb[13].mxu0  ;;  %2075 = vmatmul.mubr.msk.f32.vlgmr.msra.gmra.mrb[14].mxu1 %vm779_vm2, %v1655_v38 }
 0xafa   : > { %v1729_v46 = vpop.f32.mrb[14].mxu1 }
 0xafb   : > { %v1733_v48 = vadd.f32 %v1729_v46, %v1493_v39  ;;  %v2076_v49 = vpop.f32.mrb[15].mxu1 }
 0xafd   : > { %v1741_v50 = vadd.f32 %v1940_v47, %v1733_v48 }
 0xaff   : > { %1742 = vst.msk [vmem:[%s513_s20] sm:$0xff] %vm531_vm1, %v1741_v50 }
 0xb00   : > { %2449 = shalt.err (!%p2446_p1)
}
 0xb01   : > { %s2450_s29 = scalar_lea.hbm %s3023_s25, 128  ;;  %s2454_s11 = scalar_lea.hbm %s3148_s13, 256 }
 0xb02   : > { %p2451_p10 = scmp.ne.s32.totalorder %s3023_s25, %s2450_s29  ;;  %p2455_p2 = scmp.lt.u32.totalorder %s3023_s25, %s3148_s13 }
 0xb03   : > { %p2456_p11 = scmp.lt.u32.totalorder %s2454_s11, %s2450_s29  ;;  %p2458_p8 = scmp.lt.u32.totalorder %s2450_s29, %s3023_s25 }
 0xb04   : > { %p2452_p6 = pnand %p2451_p10, %p2827_p0 }
 0xb05   : > { %p2457_p12 = por %p2456_p11, %p2455_p2 }
 0xb06   : > { %p2453_p4 = pneg %p2452_p6 }
 0xb07   : > { %p2459_p5 = por %p2458_p8, %p2457_p12 }
 0xb09   : > { %p2460_p13 = pnand %p2459_p5, %p2453_p4 }
 0xb0b   : > { %2463 = shalt.err (!%p2460_p13)
}
 0xb0c   : > { %2117 = dma.vmem_to_hbm [thread:$0]  (%p2827_p0), %s3025_s30, 128, %s3023_s25, %s1744_s10  }
 0xb0d PF: > { %s3149_s20 = sld [smem:[#allocation22_spill]]  ;;  %s3150_s28 = sld [smem:[#allocation25_spill]] }
 0xb0e   : > { %p3152_p7 = scmp.ge.s32.totalorder %s2530_s22, 2 }
 0xb13   : > { %s1770_s4 = sand.u32 1, %s3149_s20   ;;  %p3151_p3 = scmp.ne.s32.totalorder %s3150_s28, 0 }
 0xb14   : > { %s1771_s26 = scalar_lea.sflag [#allocation6], %s1770_s4 }
 0xb15   : > { %p2143_p9 = pnand %p3152_p7, %p3151_p3 }
 0xb17   : > { %2505 = dma.done.wait (!%p2143_p9), %s1771_s26, 128  }
 0xb18   : > { %2507 = vsyncadd (!%p2143_p9), %s1771_s26, 4294967168  ;;  %s30_s22 = sadd.s32 1, %s2530_s22   ;;  %s3153_s17 = smov %s2514_s18 }
 0xb19   : > { %p27_p1 = scmp.ge.s32.totalorder %s30_s22, 4   ;;  %s3154_s18 = smov %s2518_s19 }
 0xb1a   : > { %s3155_s19 = smov %s2839_s14  ;;  %s3156_s20 = smov %s2526_s21 }
 0xb1b   : > { %s3157_s21 = smov %s3159_s27  ;;  %29 = sbr.rel (!%p27_p1) target bundleno = 17 (0x11), region = 139 }
 0xb22   :  { %1776 = vsyncpa [#allocation5], 1 }
 0xb23   :  { %1778 = vsyncpa [#allocation5 + $0x1], 1 }
 0xb24   :  { %1779 = vsyncpa [#allocation8], 1 }
 0xb25   :  { %1780 = vsyncpa [#allocation11], 1 }
 0xb26   :  { %1781 = vsyncpa [#allocation14], 1 }
 0xb27   :  { %1782 = vsyncpa [#allocation6], 1 }
 0xb28   :  { %1784 = vsyncpa [#allocation6 + $0x1], 1 }

</bundles_post_ra>
